<compile_context>
chip_gen: v7x
topology: tpu7x:2x2x1
jax: 0.10.0
libtpu: 0.0.40
codegen_flags: <defaults>
</compile_context>

<pallas_src>
import functools

import jax
import jax.numpy as jnp
from jax.experimental import pallas as pl
from jax.experimental.pallas import tpu as pltpu


LANE = 128


def _round_up(n, m):
    return ((n + m - 1) // m) * m


def _pad2(a, rows, cols):
    return jnp.pad(a, ((0, rows - a.shape[0]), (0, cols - a.shape[1])))


def _vmem_capacity_bytes():
    """Physical VMEM per core; conservative 64 MiB (v7x) if the query fails."""
    try:
        info = pltpu.get_tpu_info()
        for attr in ("vmem_capacity_bytes", "vmem_bytes", "vmem_size_bytes"):
            cap = getattr(info, attr, None)
            if cap:
                return int(cap)
    except Exception:
        pass
    return 64 << 20


def _vmem_demand_bytes(tm, f_pad, h_pad):
    # Pallas double-buffers every input by default, including the constant-
    # index "resident" weights -- count 2x for them.
    weights = 2 * (f_pad * h_pad * 2       # w1 bf16
                   + h_pad * h_pad * 2     # w2 bf16
                   + h_pad * 4             # w3 row f32
                   + 2 * h_pad * 4)        # b1, b2 f32
    x_tiles = 2 * tm * f_pad * 4           # double-buffered f32 x tile
    out_tiles = 2 * tm * LANE * 4          # (TM, 1) tile lane-padded in VMEM
    interm = tm * h_pad * 16               # h1 f32+bf16, h2 f32, w3 product
    return weights + x_tiles + out_tiles + interm + (4 << 20)


def _choose_batch_tile(batch, max_tile):
    """Even split of the batch (minimal padding), multiple of 16 rows, and at
    least 2 grid steps when B > 16 so v7x's two TCs both get work."""
    n_tiles = max(1, -(-batch // max_tile))
    if n_tiles == 1 and batch > 16:
        n_tiles = 2
    tm = _round_up(-(-batch // n_tiles), 16)
    return min(tm, _round_up(batch, 16))


def _adv_net_kernel(x_ref, w1_ref, b1_ref, w2_ref, b2_ref, w3_ref, b3_ref,
                    y_ref):
    # x tile: (TM, F_pad) f32 -> bf16 cast in-kernel (free VPU slot).
    x = x_ref[...].astype(jnp.bfloat16)

    # ad_layer1 + ReLU   (dropout1 is identity in eval mode)
    h1 = jnp.dot(x, w1_ref[...], preferred_element_type=jnp.float32)
    h1 = jnp.maximum(h1 + b1_ref[...], 0.0)

    # ad_layer2 + ReLU   (dropout2 is identity in eval mode)
    h2 = jnp.dot(h1.astype(jnp.bfloat16), w2_ref[...],
                 preferred_element_type=jnp.float32)
    h2 = jnp.maximum(h2 + b2_ref[...], 0.0)

    # ad_layer3 (out_features=1) off the MXU: VPU multiply + XLU lane-reduce,
    # all in f32.  Padded H columns of h2 and w3 are zero, so they drop out.
    z = jnp.sum(h2 * w3_ref[...], axis=-1, keepdims=True) + b3_ref[0]  # (TM,1)

    # Sigmoid: EUP exp + approximate reciprocal (free bundle slots).
    sig = pl.reciprocal(1.0 + jnp.exp(-z), approx=True)
    y_ref[...] = sig.astype(y_ref.dtype)


def prepare_params(params):
    """Pad to lane-aligned shapes and cast MXU inputs to bf16 -- ONCE, outside
    the per-call path."""
    w1, b1 = params["ad_layer1"]
    w2, b2 = params["ad_layer2"]
    w3, b3 = params["ad_layer3"]
    in_feature, hidden = w1.shape
    assert w2.shape == (hidden, hidden) and w3.shape == (hidden, 1)
    f_pad = _round_up(in_feature, LANE)
    h_pad = _round_up(hidden, LANE)
    return {
        "w1": _pad2(w1, f_pad, h_pad).astype(jnp.bfloat16),
        "b1": _pad2(b1.reshape(1, -1), 1, h_pad).astype(jnp.float32),
        "w2": _pad2(w2, h_pad, h_pad).astype(jnp.bfloat16),
        "b2": _pad2(b2.reshape(1, -1), 1, h_pad).astype(jnp.float32),
        # Layer 3 stays off the MXU: keep its weight as an f32 (1, H_pad) row.
        "w3": _pad2(w3.T, 1, h_pad).astype(jnp.float32),
        # Scalar bias lives in SMEM.
        "b3": b3.reshape(-1)[:1].astype(jnp.float32),
    }


def adversarial_network_forward(x, prepared, max_batch_tile=None):
    """x: [B, in_feature] float32.  prepared: output of prepare_params()."""
    w1, b1 = prepared["w1"], prepared["b1"]
    w2, b2 = prepared["w2"], prepared["b2"]
    w3, b3 = prepared["w3"], prepared["b3"]
    f_pad, h_pad = w1.shape

    batch, feat = x.shape
    assert feat <= f_pad, (feat, f_pad)

    phys_vmem = _vmem_capacity_bytes()
    # Leave headroom under physical VMEM: ~48 MiB cap on v7x (64 MiB phys),
    # ~100 MiB on v5e/v6e (128 MiB phys).
    vmem_cap = int(min(max(phys_vmem - (16 << 20), 16 << 20), 100 << 20))
    if max_batch_tile is None:
        max_batch_tile = 1024 if phys_vmem >= (100 << 20) else 512

    tm = _choose_batch_tile(batch, max_batch_tile)
    while _vmem_demand_bytes(tm, f_pad, h_pad) > vmem_cap and tm > 16:
        tm = max(16, _round_up(tm // 2, 16))
    b_pad = _round_up(batch, tm)

    # Feed f32 activations; pad only when unaligned (bf16 cast is in-kernel).
    if (b_pad, f_pad) != (batch, feat):
        xp = jnp.pad(x, ((0, b_pad - batch), (0, f_pad - feat)))
    else:
        xp = x

    vmem_bytes = int(min(max(_vmem_demand_bytes(tm, f_pad, h_pad), 8 << 20),
                         vmem_cap))

    grid = (b_pad // tm,)
    out = pl.pallas_call(
        _adv_net_kernel,
        out_shape=jax.ShapeDtypeStruct((b_pad, 1), jnp.float32),
        grid=grid,
        in_specs=[
            pl.BlockSpec((tm, f_pad), lambda i: (i, 0)),      # x: streamed f32
            pl.BlockSpec((f_pad, h_pad), lambda i: (0, 0)),   # w1 bf16: resident
            pl.BlockSpec((1, h_pad), lambda i: (0, 0)),       # b1 f32
            pl.BlockSpec((h_pad, h_pad), lambda i: (0, 0)),   # w2 bf16: resident
            pl.BlockSpec((1, h_pad), lambda i: (0, 0)),       # b2 f32
            pl.BlockSpec((1, h_pad), lambda i: (0, 0)),       # w3 row f32
            pl.BlockSpec(memory_space=pltpu.MemorySpace.SMEM),  # b3 scalar
        ],
        out_specs=pl.BlockSpec((tm, 1), lambda i: (i, 0)),    # 4 B/sample out
        compiler_params=pltpu.CompilerParams(
            dimension_semantics=("parallel",),
            vmem_limit_bytes=vmem_bytes,
        ),
    )(xp, w1, b1, w2, b2, w3, b3)

    # Drop batch padding only; output is already a single-column vector.
    return out[:batch]


def init_params(key, in_feature, hidden_size):
    """Matches init_weights: xavier_normal weights, zero biases.
    Weights stored as [in, out] (transposed vs PyTorch's [out, in])."""
    k1, k2, k3 = jax.random.split(key, 3)

    def xavier_normal(k, fan_in, fan_out):
        std = (2.0 / (fan_in + fan_out)) ** 0.5
        return std * jax.random.normal(k, (fan_in, fan_out), dtype=jnp.float32)

    return {
        "ad_layer1": (xavier_normal(k1, in_feature, hidden_size),
                      jnp.zeros((1, hidden_size), jnp.float32)),
        "ad_layer2": (xavier_normal(k2, hidden_size, hidden_size),
                      jnp.zeros((1, hidden_size), jnp.float32)),
        "ad_layer3": (xavier_normal(k3, hidden_size, 1),
                      jnp.zeros((1, 1), jnp.float32)),
    }


if __name__ == "__main__":
    in_feature = 32
    hidden_size = 32
    batch = 8

    key = jax.random.PRNGKey(0)
    kx, kp = jax.random.split(key)
    x = jax.random.normal(kx, (batch, in_feature), dtype=jnp.float32)
    params = init_params(kp, in_feature, hidden_size)

    prepared = prepare_params(params)   # pad + bf16-cast once, off the hot path
    fwd = jax.jit(functools.partial(adversarial_network_forward,
                                    prepared=prepared))
    y = jax.block_until_ready(fwd(x))

    # Plain-JAX f32 reference (kernel uses bf16 matmul inputs -> loose tol).
    w1, b1 = params["ad_layer1"]
    w2, b2 = params["ad_layer2"]
    w3, b3 = params["ad_layer3"]
    h = jnp.maximum(x @ w1 + b1, 0.0)
    h = jnp.maximum(h @ w2 + b2, 0.0)
    ref = jax.nn.sigmoid(h @ w3 + b3)

    assert y.shape == (batch, 1), y.shape
    assert jnp.allclose(y, ref, atol=2e-2, rtol=2e-2), (
        jnp.max(jnp.abs(y - ref)))

    print("KERNEL_OK")
</pallas_src>

<mosaic_0001>
module attributes {stable_mosaic.version = 11 : i64} {
  func.func @_adv_net_kernel(%arg0: i32, %arg1: memref<16x128xf32, #tpu.memory_space<vmem>>, %arg2: memref<128x128xbf16, #tpu.memory_space<vmem>>, %arg3: memref<1x128xf32, #tpu.memory_space<vmem>>, %arg4: memref<128x128xbf16, #tpu.memory_space<vmem>>, %arg5: memref<1x128xf32, #tpu.memory_space<vmem>>, %arg6: memref<1x128xf32, #tpu.memory_space<vmem>>, %arg7: memref<1xf32, #tpu.memory_space<smem>>, %arg8: memref<16x1xf32, #tpu.memory_space<vmem>>) attributes {dimension_semantics = [#tpu.dimension_semantics<parallel>], iteration_bounds = array<i64: 1>, scalar_prefetch = 0 : i64, scratch_operands = 0 : i64, tpu.core_type = #tpu.core_type<tc>, window_params = [{transform_indices = @transform_0, window_bounds = array<i64: 16, 128>}, {pipeline_mode = #tpu.pipeline_mode<synchronous>, transform_indices = @transform_1, window_bounds = array<i64: 128, 128>}, {pipeline_mode = #tpu.pipeline_mode<synchronous>, transform_indices = @transform_2, window_bounds = array<i64: 1, 128>}, {pipeline_mode = #tpu.pipeline_mode<synchronous>, transform_indices = @transform_3, window_bounds = array<i64: 128, 128>}, {pipeline_mode = #tpu.pipeline_mode<synchronous>, transform_indices = @transform_4, window_bounds = array<i64: 1, 128>}, {pipeline_mode = #tpu.pipeline_mode<synchronous>, transform_indices = @transform_5, window_bounds = array<i64: 1, 128>}, {transform_indices = @transform_6, window_bounds = array<i64: 1>}, {transform_indices = @transform_7, window_bounds = array<i64: 16, 1>}]} {
    %c0 = arith.constant 0 : index
    %c0_0 = arith.constant 0 : index
    %0 = vector.load %arg1[%c0, %c0_0] : memref<16x128xf32, #tpu.memory_space<vmem>>, vector<16x128xf32>
    %1 = arith.truncf %0 : vector<16x128xf32> to vector<16x128xbf16>
    %c0_1 = arith.constant 0 : index
    %c0_2 = arith.constant 0 : index
    %2 = vector.load %arg2[%c0_1, %c0_2] : memref<128x128xbf16, #tpu.memory_space<vmem>>, vector<128x128xbf16>
    %cst = arith.constant dense<0.000000e+00> : vector<16x128xf32>
    %3 = tpu.matmul %1, %2, %cst {dimension_numbers = #tpu.dot_dimension_numbers<[1], [0], [0], [1], [0, 0, 1, 1], [], []>} : vector<16x128xbf16>, vector<128x128xbf16>, vector<16x128xf32> -> vector<16x128xf32>
    %c0_3 = arith.constant 0 : index
    %c0_4 = arith.constant 0 : index
    %4 = vector.load %arg3[%c0_3, %c0_4] : memref<1x128xf32, #tpu.memory_space<vmem>>, vector<1x128xf32>
    %5 = vector.broadcast %4 : vector<1x128xf32> to vector<16x128xf32>
    %6 = arith.addf %3, %5 : vector<16x128xf32>
    %cst_5 = arith.constant 0.000000e+00 : f32
    %7 = vector.broadcast %cst_5 : f32 to vector<16x128xf32>
    %8 = arith.maximumf %6, %7 : vector<16x128xf32>
    %9 = arith.truncf %8 : vector<16x128xf32> to vector<16x128xbf16>
    %c0_6 = arith.constant 0 : index
    %c0_7 = arith.constant 0 : index
    %10 = vector.load %arg4[%c0_6, %c0_7] : memref<128x128xbf16, #tpu.memory_space<vmem>>, vector<128x128xbf16>
    %cst_8 = arith.constant dense<0.000000e+00> : vector<16x128xf32>
    %11 = tpu.matmul %9, %10, %cst_8 {dimension_numbers = #tpu.dot_dimension_numbers<[1], [0], [0], [1], [0, 0, 1, 1], [], []>} : vector<16x128xbf16>, vector<128x128xbf16>, vector<16x128xf32> -> vector<16x128xf32>
    %c0_9 = arith.constant 0 : index
    %c0_10 = arith.constant 0 : index
    %12 = vector.load %arg5[%c0_9, %c0_10] : memref<1x128xf32, #tpu.memory_space<vmem>>, vector<1x128xf32>
    %13 = vector.broadcast %12 : vector<1x128xf32> to vector<16x128xf32>
    %14 = arith.addf %11, %13 : vector<16x128xf32>
    %cst_11 = arith.constant 0.000000e+00 : f32
    %15 = vector.broadcast %cst_11 : f32 to vector<16x128xf32>
    %16 = arith.maximumf %14, %15 : vector<16x128xf32>
    %c0_12 = arith.constant 0 : index
    %c0_13 = arith.constant 0 : index
    %17 = vector.load %arg6[%c0_12, %c0_13] : memref<1x128xf32, #tpu.memory_space<vmem>>, vector<1x128xf32>
    %18 = vector.broadcast %17 : vector<1x128xf32> to vector<16x128xf32>
    %19 = arith.mulf %16, %18 : vector<16x128xf32>
    %cst_14 = arith.constant dense<0.000000e+00> : vector<16xf32>
    %20 = vector.multi_reduction <add>, %19, %cst_14 [1] : vector<16x128xf32> to vector<16xf32>
    %21 = vector.shape_cast %20 : vector<16xf32> to vector<16x1xf32>
    %c0_15 = arith.constant 0 : index
    %22 = memref.load %arg7[%c0_15] : memref<1xf32, #tpu.memory_space<smem>>
    %23 = vector.broadcast %22 : f32 to vector<16x1xf32>
    %24 = arith.addf %21, %23 : vector<16x1xf32>
    %cst_16 = arith.constant 0.000000e+00 : f32
    %25 = vector.broadcast %cst_16 : f32 to vector<16x1xf32>
    %26 = arith.subf %25, %24 : vector<16x1xf32>
    %27 = math.exp %26 : vector<16x1xf32>
    %cst_17 = arith.constant 1.000000e+00 : f32
    %28 = vector.broadcast %cst_17 : f32 to vector<16x1xf32>
    %29 = arith.addf %28, %27 : vector<16x1xf32>
    %30 = tpu.reciprocal %29 {approx = true} : vector<16x1xf32> -> vector<16x1xf32>
    %c0_18 = arith.constant 0 : index
    %c0_19 = arith.constant 0 : index
    %31 = vector.load %arg8[%c0_18, %c0_19] : memref<16x1xf32, #tpu.memory_space<vmem>>, vector<16x1xf32>
    tpu.vector_store %arg8[%c0_18, %c0_19], %30 {strides = array<i32>} : memref<16x1xf32, #tpu.memory_space<vmem>>, vector<16x1xf32>,
    return
  }
  func.func @transform_0(%arg0: i32) -> (i32, i32) {
    %c0_i32 = arith.constant 0 : i32
    %c0_i32_0 = arith.constant 0 : i32
    return %arg0, %c0_i32 : i32, i32
  }
  func.func @transform_1(%arg0: i32) -> (i32, i32) {
    %c0_i32 = arith.constant 0 : i32
    %c0_i32_0 = arith.constant 0 : i32
    %c0_i32_1 = arith.constant 0 : i32
    return %c0_i32, %c0_i32_0 : i32, i32
  }
  func.func @transform_2(%arg0: i32) -> (i32, i32) {
    %c0_i32 = arith.constant 0 : i32
    %c0_i32_0 = arith.constant 0 : i32
    %c0_i32_1 = arith.constant 0 : i32
    return %c0_i32, %c0_i32_0 : i32, i32
  }
  func.func @transform_3(%arg0: i32) -> (i32, i32) {
    %c0_i32 = arith.constant 0 : i32
    %c0_i32_0 = arith.constant 0 : i32
    %c0_i32_1 = arith.constant 0 : i32
    return %c0_i32, %c0_i32_0 : i32, i32
  }
  func.func @transform_4(%arg0: i32) -> (i32, i32) {
    %c0_i32 = arith.constant 0 : i32
    %c0_i32_0 = arith.constant 0 : i32
    %c0_i32_1 = arith.constant 0 : i32
    return %c0_i32, %c0_i32_0 : i32, i32
  }
  func.func @transform_5(%arg0: i32) -> (i32, i32) {
    %c0_i32 = arith.constant 0 : i32
    %c0_i32_0 = arith.constant 0 : i32
    %c0_i32_1 = arith.constant 0 : i32
    return %c0_i32, %c0_i32_0 : i32, i32
  }
  func.func @transform_6(%arg0: i32) -> i32 {
    %c0_i32 = arith.constant 0 : i32
    %c0_i32_0 = arith.constant 0 : i32
    return %c0_i32 : i32
  }
  func.func @transform_7(%arg0: i32) -> (i32, i32) {
    %c0_i32 = arith.constant 0 : i32
    %c0_i32_0 = arith.constant 0 : i32
    return %arg0, %c0_i32 : i32, i32
  }
}

</mosaic_0001>

<bundles_post_ra>
// kernel: adversarial_network_forward.1
= control target key start
LH: loop header
LB: loop body
LE: loop exit
PB: predicated region body
PF: predicated region fallthrough
CT: control target
= control target key end

     0   :  { %13 = vsyncpa [#allocation4], 0  ;;  %s573_s0 = inlined_call_operand.vmem [shape: f32[16,128], index: 0, kind: input, shape index: {}]   ;;  %s574_s1 = inlined_call_operand.hbm [shape: bf16[128,128], index: 1, kind: input, shape index: {}]   ;;  %s575_s2 = inlined_call_operand.vmem [shape: f32[1,128], index: 2, kind: input, shape index: {}, may-alias: {2,4}]   ;;  %s576_s3 = inlined_call_operand.hbm [shape: bf16[128,128], index: 3, kind: input, shape index: {}]   ;;  %s577_s4 = inlined_call_operand.vmem [shape: f32[1,128], index: 4, kind: input, shape index: {}, may-alias: {2,4}]   ;;  %s578_s5 = inlined_call_operand.vmem [shape: f32[1,128], index: 5, kind: input, shape index: {}]   ;;  %s579_s6 = inlined_call_operand.<no memory space> [shape: f32[1], index: 6, kind: input, shape index: {}]   ;;  %s580_s7 = inlined_call_operand.vmem [shape: f32[16,1], index: 7, kind: output, shape index: {}]  }
   0x1   :  { %14 = vsyncpa [#allocation6], 0  ;;  %s479_s24 = smov [#allocation3]   ;;  %s431_s28 = scalar_lea.hbm %s574_s1, 1024 }
   0x2   :  { %s22_s25 = sshll.u32 %s479_s24, 4  ;;  %p432_p0 = scmp.ne.s32.totalorder %s574_s1, %s431_s28  ;;  %s23_s25 = int_to_ptr.vmem [resolvable:$true] %s22_s25 }
   0x3   :  { %p435_p1 = scmp.lt.u32.totalorder %s431_s28, %s574_s1 }
   0x5   :  { %p437_p2 = pnand %p435_p1, %p432_p0 }
   0x7   :  { %440 = shalt.err (!%p437_p2)
}
   0x8   :  { %s441_s10 = scalar_lea.vmem %s23_s25, 1024  ;;  %p446_p4 = scmp.lt.s32.totalorder %s23_s25, %s23_s25 }
   0x9   :  { %p442_p3 = scmp.ne.s32.totalorder %s23_s25, %s441_s10  ;;  %p447_p5 = scmp.lt.s32.totalorder %s441_s10, %s441_s10 }
   0xb   :  { %p448_p6 = por %p447_p5, %p446_p4 }
   0xd   :  { %p449_p7 = pnand %p448_p6, %p442_p3 }
   0xf   :  { %452 = shalt.err (!%p449_p7)
}
  0x10   :  { %s480_s11 = smov 64   ;;  %s481_s12 = smov 4  }
  0x11   :  { %28 = dma.hbm_to_vmem [thread:$0]  %s574_s1, 1024, %s23_s25, [#allocation4], %s480_s11, %s480_s11, %s481_s12  }
  0x12   :  { %s482_s15 = smov [#allocation5]   ;;  %s453_s19 = scalar_lea.hbm %s576_s3, 1024 }
  0x13   :  { %s36_s16 = sshll.u32 %s482_s15, 4  ;;  %p454_p8 = scmp.ne.s32.totalorder %s576_s3, %s453_s19  ;;  %s37_s16 = int_to_ptr.vmem [resolvable:$true] %s36_s16 }
  0x14   :  { %p457_p9 = scmp.lt.u32.totalorder %s453_s19, %s576_s3 }
  0x16   :  { %p459_p10 = pnand %p457_p9, %p454_p8 }
  0x18   :  { %462 = shalt.err (!%p459_p10)
}
  0x19   :  { %s463_s24 = scalar_lea.vmem %s37_s16, 1024  ;;  %p468_p12 = scmp.lt.s32.totalorder %s37_s16, %s37_s16 }
  0x1a   :  { %p464_p11 = scmp.ne.s32.totalorder %s37_s16, %s463_s24  ;;  %p469_p13 = scmp.lt.s32.totalorder %s463_s24, %s463_s24 }
  0x1c   :  { %p470_p0 = por %p469_p13, %p468_p12 }
  0x1e   :  { %p471_p1 = pnand %p470_p0, %p464_p11 }
  0x20   :  { %474 = shalt.err (!%p471_p1)
}
  0x21   :  { %42 = dma.hbm_to_vmem [thread:$0]  %s576_s3, 1024, %s37_s16, [#allocation6], %s480_s11, %s480_s11, %s481_s12  }
  0x22   :  { %475 = dma.done.wait [#allocation4], 1024  }
  0x23   :  { %476 = vsyncadd [#allocation4], 4294966272 }
  0x24   :  { %477 = dma.done.wait [#allocation6], 1024  }
  0x25   :  { %478 = vsyncadd [#allocation6], 4294966272  ;;  %v483_v0 = vmov 0.0   ;;  %vm484_vm0 = vmmov 0   ;;  %v407_v1 = vld [vmem:[#allocation3] sm:$0xff]   ;;  %v408_v2 = vld [vmem:[#allocation3 + $0x8] sm:$0xff]   ;;  %v302_v42 = vstv %s579_s6 }
  0x26   :  { %361 = vmatprep.subr.bf16.mxu0 %v483_v0  ;;  %377 = vmatprep.mubr.msk.bf16.mxu0 %vm484_vm0, %v483_v0  ;;  %v409_v3 = vld [vmem:[#allocation3 + $0x10] sm:$0xff]   ;;  %v415_v4 = vld [vmem:[#allocation5] sm:$0xff]   ;;  %v410_v5 = vld [vmem:[#allocation3 + $0x18] sm:$0xff]   ;;  %vm315_vm1 = vcmask 7168  }
  0x27   :  { %381 = vmatprep.subr.bf16.mxu1 %v483_v0  ;;  %397 = vmatprep.mubr.msk.bf16.mxu1 %vm484_vm0, %v483_v0  ;;  %v416_v6 = vld [vmem:[#allocation5 + $0x8] sm:$0xff]   ;;  %v411_v7 = vld [vmem:[#allocation3 + $0x20] sm:$0xff]   ;;  %v417_v8 = vld [vmem:[#allocation5 + $0x10] sm:$0xff]  }
  0x28   :  { %362 = vmatpush3.bf16.msra.mxu0 %v407_v1  ;;  %382 = vmatpush3.bf16.msra.mxu1 %v415_v4  ;;  %v412_v9 = vld [vmem:[#allocation3 + $0x28] sm:$0xff]   ;;  %v418_v10 = vld [vmem:[#allocation5 + $0x18] sm:$0xff]   ;;  %v413_v11 = vld [vmem:[#allocation3 + $0x30] sm:$0xff]  }
  0x29   :  { %363 = vmatprep.subr.bf16.mxu0 %v483_v0  ;;  %383 = vmatprep.subr.bf16.mxu1 %v483_v0  ;;  %v419_v12 = vld [vmem:[#allocation5 + $0x20] sm:$0xff]   ;;  %v414_v13 = vld [vmem:[#allocation3 + $0x38] sm:$0xff]   ;;  %v57_v15 = vld [vmem:[%s573_s0 + $0x8] sm:$0xff] }
  0x2a   :  { %v56_v14 = vld [vmem:[%s573_s0] sm:$0xff]  ;;  %v420_v16 = vld [vmem:[#allocation5 + $0x28] sm:$0xff]   ;;  %v421_v18 = vld [vmem:[#allocation5 + $0x30] sm:$0xff]  }
  0x2b   :  { %v58_v17 = vpack.c.bf16 %v57_v15, %v56_v14  ;;  %v422_v19 = vld [vmem:[#allocation5 + $0x38] sm:$0xff]   ;;  %v324_v20 = vld [vmem:[%s575_s2] ss:$0 sm:$0xff] }
  0x2c   :  { %364 = vmatpush3.bf16.msra.mxu0 %v408_v2  ;;  %384 = vmatpush3.bf16.msra.mxu1 %v416_v6  ;;  %v333_v30 = vld [vmem:[%s577_s4] ss:$0 sm:$0xff] }
  0x2d   :  { %365 = vmatprep.subr.bf16.mxu0 %v483_v0  ;;  %385 = vmatprep.subr.bf16.mxu1 %v483_v0  ;;  %v342_v35 = vld [vmem:[%s578_s5] ss:$0 sm:$0xff] }
  0x30   :  { %366 = vmatpush3.bf16.msra.mxu0 %v409_v3  ;;  %386 = vmatpush3.bf16.msra.mxu1 %v417_v8 }
  0x31   :  { %367 = vmatprep.subr.bf16.mxu0 %v483_v0  ;;  %387 = vmatprep.subr.bf16.mxu1 %v483_v0 }
  0x34   :  { %368 = vmatpush3.bf16.msra.mxu0 %v410_v5  ;;  %388 = vmatpush3.bf16.msra.mxu1 %v418_v10 }
  0x35   :  { %369 = vmatprep.subr.bf16.mxu0 %v483_v0  ;;  %389 = vmatprep.subr.bf16.mxu1 %v483_v0 }
  0x38   :  { %370 = vmatpush3.bf16.msra.mxu0 %v411_v7  ;;  %390 = vmatpush3.bf16.msra.mxu1 %v419_v12 }
  0x39   :  { %371 = vmatprep.subr.bf16.mxu0 %v483_v0  ;;  %391 = vmatprep.subr.bf16.mxu1 %v483_v0 }
  0x3c   :  { %372 = vmatpush3.bf16.msra.mxu0 %v412_v9  ;;  %392 = vmatpush3.bf16.msra.mxu1 %v420_v16 }
  0x3d   :  { %373 = vmatprep.subr.bf16.mxu0 %v483_v0  ;;  %393 = vmatprep.subr.bf16.mxu1 %v483_v0 }
  0x40   :  { %374 = vmatpush3.bf16.msra.mxu0 %v413_v11  ;;  %394 = vmatpush3.bf16.msra.mxu1 %v421_v18 }
  0x41   :  { %375 = vmatprep.subr.bf16.mxu0 %v483_v0  ;;  %395 = vmatprep.subr.bf16.mxu1 %v483_v0 }
  0x44   :  { %376 = vmatpush3.bf16.msra.mxu0 %v414_v13  ;;  %396 = vmatpush3.bf16.msra.mxu1 %v422_v19 }
  0x47   :  { %378 = vmatmul.mubr.bf16.vlgmr.msra.gmra.mrb[0].mxu0 %v58_v17 }
 0x11a   :  { %v164_v21 = vpop.f32.mrb[0].mxu0 }
 0x11b   :  { %v165_v22 = vadd.f32 %v324_v20, %v164_v21  ;;  %v379_v23 = vpop.f32.mrb[1].mxu0 }
 0x11c   :  { %v167_v24 = vpop.f32.mrb[2].mxu0 }
 0x11d   :  { %v168_v25 = vadd.f32 %v324_v20, %v167_v24  ;;  %v380_v26 = vpop.f32.mrb[3].mxu0  ;;  %v171_v27 = vmax.f32 %v165_v22, 0.0 }
 0x11f   :  { %v172_v28 = vmax.f32 %v168_v25, 0.0 }
 0x121   :  { %v173_v29 = vpack.c.bf16 %v172_v28, %v171_v27 }
 0x123   :  { %398 = vmatmul.mubr.bf16.vlgmr.msra.gmra.mrb[0].mxu1 %v173_v29 }
 0x1f6   :  { %v279_v31 = vpop.f32.mrb[0].mxu1 }
 0x1f7   :  { %v280_v32 = vadd.f32 %v333_v30, %v279_v31  ;;  %v399_v33 = vpop.f32.mrb[1].mxu1 }
 0x1f8   :  { %v282_v34 = vpop.f32.mrb[2].mxu1 }
 0x1f9   :  { %v286_v36 = vmax.f32 %v280_v32, 0.0  ;;  %v283_v37 = vadd.f32 %v333_v30, %v282_v34  ;;  %v400_v38 = vpop.f32.mrb[3].mxu1 }
 0x1fb   :  { %v287_v39 = vmax.f32 %v283_v37, 0.0  ;;  %v295_v40 = vmul.f32 %v342_v35, %v286_v36 }
 0x1fd   :  { %297 = vadd.xlane.f32.xlu0 %v295_v40  ;;  %v296_v41 = vmul.f32 %v342_v35, %v287_v39 }
 0x201   :  { %299 = vadd.xlane.f32.xlu0 %v296_v41 }
 0x28a   :  { %v298_v43 = vpop.xlane.xlu0 %297 }
 0x28b   :  { %v303_v44 = vadd.f32 %v302_v42, %v298_v43 }
 0x28d   :  { %v305_v45 = vsub.f32 0.0, %v303_v44 }
 0x28e   :  { %v300_v46 = vpop.xlane.xlu0 %299 }
 0x28f   :  { %v307_v47 = vmul.f32 1.442695, %v305_v45  ;;  %v304_v48 = vadd.f32 %v302_v42, %v300_v46 }
 0x291   :  { %423 = vpow2.f32 %v307_v47  ;;  %v306_v49 = vsub.f32 0.0, %v304_v48 }
 0x293   :  { %v309_v50 = vmul.f32 1.442695, %v306_v49 }
 0x295   :  { %425 = vpow2.f32 %v309_v50 }
 0x29b   :  { %v424_v51 = vpop.eup %423 }
 0x29c   :  { %v311_v52 = vadd.f32 1.0, %v424_v51 }
 0x29e   :  { %427 = vrcp.f32 %v311_v52 }
 0x29f   :  { %v426_v53 = vpop.eup %425 }
 0x2a0   :  { %v312_v54 = vadd.f32 1.0, %v426_v53 }
 0x2a2   :  { %429 = vrcp.f32 %v312_v54 }
 0x2a8   :  { %v428_v55 = vpop.eup %427 }
 0x2a9   :  { %316 = vst.msk [vmem:[%s580_s7] sm:$0xff] %vm315_vm1, %v428_v55 }
 0x2ac   :  { %v430_v56 = vpop.eup %429 }
 0x2ad   :  { %317 = vst.msk [vmem:[%s580_s7 + $0x8] sm:$0xff] %vm315_vm1, %v430_v56 }
 0x2ae   :  { %322 = vsyncpa [#allocation4], 1 }
 0x2af   :  { %323 = vsyncpa [#allocation6], 1 }

</bundles_post_ra>
